<compile_context>
chip_gen: v6e
topology: v6e:2x2x1
jax: 0.10.0
libtpu: 0.0.40
codegen_flags: <defaults>
</compile_context>

<pallas_src>
import functools

import jax
import jax.numpy as jnp
import numpy as np
from jax import lax
from jax.experimental import pallas as pl
from jax.experimental.pallas import tpu as pltpu

ALPHA = 10000.0   # Cosine_aug alpha
BETA = 1.0        # Cosine_aug beta (dim_embed = beta^(0/1) = 1)
BN_EPS = 1e-4     # norm_fn = BatchNorm1d(eps=1e-4)


def _round_up(x, mult):
    return ((x + mult - 1) // mult) * mult


# ---------------------------------------------------------------------------
# Shared fused projection (channel-major):
#   h^T (m, T) = Wf^T @ feat^T + Ws^T @ sin(a*xyz)^T + Wc^T @ cos(a*xyz)^T
# All three dots are standard (M, K) x (K, T) with tiny K (input_c / 3 / 3);
# the concat([features, ret_cos]) of the reference is never materialized.
# ---------------------------------------------------------------------------
def _project_t(feat_t, xyz_t, wf_t, ws_t, wc_t):
    h = jnp.dot(wf_t, feat_t, preferred_element_type=jnp.float32)
    div = ALPHA * xyz_t                                  # (3, T) lane-dense
    h = h + jnp.dot(ws_t, jnp.sin(div), preferred_element_type=jnp.float32)
    h = h + jnp.dot(wc_t, jnp.cos(div), preferred_element_type=jnp.float32)
    return h                                             # (m, T) f32


# ---------------------------------------------------------------------------
# Kernel A: fused embed + projection + per-tile BN partial statistics
# ---------------------------------------------------------------------------
def _stats_kernel(feat_t_ref, xyz_t_ref, wf_t_ref, ws_t_ref, wc_t_ref,
                  sum_ref, sq_ref, *, last_valid, needs_mask):
    h = _project_t(feat_t_ref[...], xyz_t_ref[...],
                   wf_t_ref[...], ws_t_ref[...], wc_t_ref[...])   # (m, T)

    def _write(hm):
        sum_ref[...] = jnp.broadcast_to(
            jnp.sum(hm, axis=1, keepdims=True), sum_ref.shape)    # (m, 128)
        sq_ref[...] = jnp.broadcast_to(
            jnp.sum(hm * hm, axis=1, keepdims=True), sq_ref.shape)

    if not needs_mask:
        # N is a tile multiple: no padded columns anywhere, never mask.
        _write(h)
    else:
        is_last = pl.program_id(0) == pl.num_programs(0) - 1

        @pl.when(jnp.logical_not(is_last))
        def _():                      # interior tiles: unmasked fast path
            _write(h)

        @pl.when(is_last)
        def _():                      # only the last tile carries padded columns
            col = lax.broadcasted_iota(jnp.int32, (1, h.shape[1]), 1)
            _write(jnp.where(col < last_valid, h, 0.0))


# ---------------------------------------------------------------------------
# Kernel B: recompute projection, BN (folded scale/shift) + ReLU + Linear,
# lane-dense transposed output (classes_pad, T).
# ---------------------------------------------------------------------------
def _scores_kernel(feat_t_ref, xyz_t_ref, wf_t_ref, ws_t_ref, wc_t_ref,
                   scale_ref, shift_ref, wl_t_ref, bl_t_ref, o_ref):
    h = _project_t(feat_t_ref[...], xyz_t_ref[...],
                   wf_t_ref[...], ws_t_ref[...], wc_t_ref[...])   # (m, T)
    a = jnp.maximum(h * scale_ref[...] + shift_ref[...], 0.0)     # BN + ReLU
    o_ref[...] = jnp.dot(wl_t_ref[...], a,
                         preferred_element_type=jnp.float32) + bl_t_ref[...]


# ---------------------------------------------------------------------------
# Forward pass
# ---------------------------------------------------------------------------
def semantic_forward(features, xyz, batch, params, tile_n=16384):
    # The per-batch python loop in the reference is a no-op reordering:
    # Cosine_aug is purely per-point and spconv point lists are sorted by batch
    # id (asserted in UBlock), so cat_i(pose_ini(xyz[batch==i])) == pose_ini(xyz).
    del batch
    n, input_c = features.shape
    w_in = params["w_in_center"]                       # (input_c + 6, m) center tap
    m = w_in.shape[1]
    classes = params["w_lin"].shape[1]
    classes_pad = _round_up(classes, 8)

    # Channel-major weights (tiny) so every in-kernel matmul is a standard dot.
    # Positional rows of w_in are interleaved [sin_x,cos_x,sin_y,cos_y,sin_z,cos_z].
    wf_t = w_in[:input_c].T                            # (m, input_c)
    w_pos = w_in[input_c:]                             # (6, m)
    ws_t = w_pos[0::2].T                               # (m, 3)  sin rows
    wc_t = w_pos[1::2].T                               # (m, 3)  cos rows
    wl_t = jnp.pad(params["w_lin"].T,
                   ((0, classes_pad - classes), (0, 0)))            # (classes_pad, m)
    bl_t = jnp.pad(params["b_lin"].reshape(classes, 1),
                   ((0, classes_pad - classes), (0, 0)))            # (classes_pad, 1)

    # Tile sizing: big tiles amortize the ~0.35us/step pipeline overhead; for
    # moderate N still split into >=2 tiles so v7x's two TensorCores both get
    # work under dimension_semantics=("parallel",).
    if n <= 128:
        tile = 128
    else:
        tile = min(_round_up(tile_n, 128), _round_up(pl.cdiv(n, 2), 128))
    n_pad = _round_up(n, tile)
    num_tiles = n_pad // tile
    pad = n_pad - n

    # Channel-major, lane-dense point data: contiguous DMAs, no lane masking,
    # and no zero sublane rows in HBM (xyz stays 3 rows; the VMEM pad to 8
    # sublanes is free).  TODO(synk): in the full pipeline the producer would
    # emit these layouts directly instead of this wrapper transpose+pad.
    feat_t = jnp.pad(features.T, ((0, 0), (0, pad)))   # (input_c, n_pad)
    xyz_t = jnp.pad(xyz.T, ((0, 0), (0, pad)))         # (3, n_pad)

    grid = (num_tiles,)
    cparams = pltpu.CompilerParams(dimension_semantics=("parallel",),
                                   vmem_limit_bytes=48 * 1024 * 1024)

    data_specs = [
        pl.BlockSpec((input_c, tile), lambda i: (0, i)),   # features (channel-major)
        pl.BlockSpec((3, tile), lambda i: (0, i)),         # xyz (channel-major)
    ]
    weight_specs = [
        pl.BlockSpec((m, input_c), lambda i: (0, 0)),      # resident weights
        pl.BlockSpec((m, 3), lambda i: (0, 0)),
        pl.BlockSpec((m, 3), lambda i: (0, 0)),
    ]

    # ---- pass 1: projection + per-tile BN partial statistics (parallel) -----
    psum, psq = pl.pallas_call(
        functools.partial(_stats_kernel,
                          last_valid=n - (num_tiles - 1) * tile,
                          needs_mask=pad > 0),
        out_shape=(jax.ShapeDtypeStruct((m, num_tiles * 128), jnp.float32),
                   jax.ShapeDtypeStruct((m, num_tiles * 128), jnp.float32)),
        grid=grid,
        in_specs=data_specs + weight_specs,
        out_specs=(pl.BlockSpec((m, 128), lambda i: (0, i)),
                   pl.BlockSpec((m, 128), lambda i: (0, i))),
        compiler_params=cparams,
    )(feat_t, xyz_t, wf_t, ws_t, wc_t)

    # BatchNorm1d(m, eps=1e-4) training-mode batch stats (weight=1, bias=0 via
    # set_bn_init), folded into one per-channel scale/shift FMA for kernel B.
    # NOTE: var = E[h^2] - E[h]^2 matches the pure-JAX reference below; a
    # centered (Welford/Chan) combine would be more robust if |mean| >> std.
    total_sum = psum.reshape(m, num_tiles, 128)[:, :, 0].sum(axis=1, keepdims=True)
    total_sq = psq.reshape(m, num_tiles, 128)[:, :, 0].sum(axis=1, keepdims=True)
    mean = total_sum / n                                   # (m, 1)
    var = jnp.maximum(total_sq / n - mean * mean, 0.0)     # biased var (BN normalize)
    invstd = lax.rsqrt(var + BN_EPS)
    scale = params["bn_gamma"].reshape(m, 1) * invstd      # (m, 1)
    shift = params["bn_beta"].reshape(m, 1) - mean * scale # (m, 1)

    # ---- pass 2: recompute projection, BN + ReLU + Linear, lane-dense out ---
    scores_t = pl.pallas_call(
        _scores_kernel,
        out_shape=jax.ShapeDtypeStruct((classes_pad, n_pad), jnp.float32),
        grid=grid,
        in_specs=data_specs + weight_specs + [
            pl.BlockSpec((m, 1), lambda i: (0, 0)),              # BN scale
            pl.BlockSpec((m, 1), lambda i: (0, 0)),              # BN shift
            pl.BlockSpec((classes_pad, m), lambda i: (0, 0)),    # linear weight^T
            pl.BlockSpec((classes_pad, 1), lambda i: (0, 0)),    # linear bias
        ],
        out_specs=pl.BlockSpec((classes_pad, tile), lambda i: (0, i)),
        compiler_params=cparams,
    )(feat_t, xyz_t, wf_t, ws_t, wc_t, scale, shift, wl_t, bl_t)

    # (classes_pad, n_pad) channel-major slab -> module-compatible (N, classes).
    return scores_t[:classes, :n].T


# ---------------------------------------------------------------------------
# Pure-JAX reference (same math) for a sanity check.
# ---------------------------------------------------------------------------
def semantic_reference(features, xyz, params):
    div = ALPHA * xyz
    s, c = jnp.sin(div), jnp.cos(div)
    ret_cos = jnp.stack([s, c], axis=-1).reshape(xyz.shape[0], 6)
    feats = jnp.concatenate([features, ret_cos], axis=1)
    h = feats @ params["w_in_center"]
    mean = jnp.mean(h, axis=0, keepdims=True)
    var = jnp.mean(h * h, axis=0, keepdims=True) - mean * mean
    xn = (h - mean) / jnp.sqrt(var + BN_EPS) * params["bn_gamma"] + params["bn_beta"]
    hh = jnp.maximum(xn, 0.0)
    return hh @ params["w_lin"] + params["b_lin"]


def _make_case(key, n, input_c, m, classes):
    cin = input_c + 6
    k1, k2, k3, k4, k5 = jax.random.split(key, 5)
    features = jax.random.normal(k1, (n, input_c), dtype=jnp.float32)
    xyz = jax.random.uniform(k2, (n, 3), dtype=jnp.float32)
    batch = jnp.concatenate([jnp.zeros(n // 2, jnp.int32),
                             jnp.ones(n - n // 2, jnp.int32)])      # sorted by batch
    w_subm = 0.02 * jax.random.normal(k3, (3, 3, 3, cin, m), dtype=jnp.float32)
    params = {
        "w_in_center": w_subm[1, 1, 1],                             # (cin, m) center tap
        "bn_gamma": jnp.ones((1, m), jnp.float32),                  # set_bn_init
        "bn_beta": jnp.zeros((1, m), jnp.float32),
        "w_lin": (0.02 * jax.random.normal(k4, (classes, m), jnp.float32)).T,
        "b_lin": 0.02 * jax.random.normal(k5, (1, classes), jnp.float32),
    }
    return features, xyz, batch, params


if __name__ == "__main__":
    input_c, m, classes = 4, 32, 8
    key = jax.random.PRNGKey(0)
    k_a, k_b = jax.random.split(key, 2)

    # Case 1: N=200 -> 2 tiles of 128 (exercises the masked last-tile path and
    # the multi-tile BN partial-stat reduction), default tile_n.
    features, xyz, batch, params = _make_case(k_a, 200, input_c, m, classes)
    ref = semantic_reference(features, xyz, params)
    scores = jax.block_until_ready(semantic_forward(features, xyz, batch, params))
    assert scores.shape == (200, classes)
    assert bool(jnp.all(jnp.isfinite(scores)))
    np.testing.assert_allclose(np.asarray(scores), np.asarray(ref),
                               rtol=2e-2, atol=2e-2)

    # Case 2: N=384 with tile_n=128 -> 3 tiles, no padding (exercises the
    # unmasked static fast path and >2 grid steps).
    features2, xyz2, batch2, params2 = _make_case(k_b, 384, input_c, m, classes)
    ref2 = semantic_reference(features2, xyz2, params2)
    scores2 = jax.block_until_ready(
        semantic_forward(features2, xyz2, batch2, params2, tile_n=128))
    np.testing.assert_allclose(np.asarray(scores2), np.asarray(ref2),
                               rtol=2e-2, atol=2e-2)

    print("KERNEL_OK")
</pallas_src>

<mosaic_0001>
module attributes {stable_mosaic.version = 11 : i64} {
  func.func @_stats_kernel(%arg0: i32, %arg1: memref<4x128xf32, #tpu.memory_space<vmem>>, %arg2: memref<3x128xf32, #tpu.memory_space<vmem>>, %arg3: memref<32x4xf32, #tpu.memory_space<vmem>>, %arg4: memref<32x3xf32, #tpu.memory_space<vmem>>, %arg5: memref<32x3xf32, #tpu.memory_space<vmem>>, %arg6: memref<32x128xf32, #tpu.memory_space<vmem>>, %arg7: memref<32x128xf32, #tpu.memory_space<vmem>>) attributes {dimension_semantics = [#tpu.dimension_semantics<parallel>], iteration_bounds = array<i64: 2>, scalar_prefetch = 0 : i64, scratch_operands = 0 : i64, tpu.core_type = #tpu.core_type<tc>, window_params = [{transform_indices = @transform_0, window_bounds = array<i64: 4, 128>}, {transform_indices = @transform_1, window_bounds = array<i64: 3, 128>}, {pipeline_mode = #tpu.pipeline_mode<synchronous>, transform_indices = @transform_2, window_bounds = array<i64: 32, 4>}, {pipeline_mode = #tpu.pipeline_mode<synchronous>, transform_indices = @transform_3, window_bounds = array<i64: 32, 3>}, {pipeline_mode = #tpu.pipeline_mode<synchronous>, transform_indices = @transform_4, window_bounds = array<i64: 32, 3>}, {transform_indices = @transform_5, window_bounds = array<i64: 32, 128>}, {transform_indices = @transform_6, window_bounds = array<i64: 32, 128>}]} {
    %c0 = arith.constant 0 : index
    %c0_0 = arith.constant 0 : index
    %0 = vector.load %arg1[%c0, %c0_0] : memref<4x128xf32, #tpu.memory_space<vmem>>, vector<4x128xf32>
    %c0_1 = arith.constant 0 : index
    %c0_2 = arith.constant 0 : index
    %1 = vector.load %arg2[%c0_1, %c0_2] : memref<3x128xf32, #tpu.memory_space<vmem>>, vector<3x128xf32>
    %c0_3 = arith.constant 0 : index
    %c0_4 = arith.constant 0 : index
    %2 = vector.load %arg3[%c0_3, %c0_4] : memref<32x4xf32, #tpu.memory_space<vmem>>, vector<32x4xf32>
    %c0_5 = arith.constant 0 : index
    %c0_6 = arith.constant 0 : index
    %3 = vector.load %arg4[%c0_5, %c0_6] : memref<32x3xf32, #tpu.memory_space<vmem>>, vector<32x3xf32>
    %c0_7 = arith.constant 0 : index
    %c0_8 = arith.constant 0 : index
    %4 = vector.load %arg5[%c0_7, %c0_8] : memref<32x3xf32, #tpu.memory_space<vmem>>, vector<32x3xf32>
    %cst = arith.constant dense<0.000000e+00> : vector<32x128xf32>
    %5 = tpu.matmul %2, %0, %cst {dimension_numbers = #tpu.dot_dimension_numbers<[1], [0], [0], [1], [0, 0, 1, 1], [], []>} : vector<32x4xf32>, vector<4x128xf32>, vector<32x128xf32> -> vector<32x128xf32>
    %cst_9 = arith.constant 1.000000e+04 : f32
    %6 = vector.broadcast %cst_9 : f32 to vector<3x128xf32>
    %7 = arith.mulf %6, %1 : vector<3x128xf32>
    %8 = math.sin %7 : vector<3x128xf32>
    %cst_10 = arith.constant dense<0.000000e+00> : vector<32x128xf32>
    %9 = tpu.matmul %3, %8, %cst_10 {dimension_numbers = #tpu.dot_dimension_numbers<[1], [0], [0], [1], [0, 0, 1, 1], [], []>} : vector<32x3xf32>, vector<3x128xf32>, vector<32x128xf32> -> vector<32x128xf32>
    %10 = arith.addf %5, %9 : vector<32x128xf32>
    %11 = math.cos %7 : vector<3x128xf32>
    %cst_11 = arith.constant dense<0.000000e+00> : vector<32x128xf32>
    %12 = tpu.matmul %4, %11, %cst_11 {dimension_numbers = #tpu.dot_dimension_numbers<[1], [0], [0], [1], [0, 0, 1, 1], [], []>} : vector<32x3xf32>, vector<3x128xf32>, vector<32x128xf32> -> vector<32x128xf32>
    %13 = arith.addf %10, %12 : vector<32x128xf32>
    %c1_i32 = arith.constant 1 : i32
    %14 = arith.cmpi eq, %arg0, %c1_i32 : i32
    %true = arith.constant true
    %15 = arith.xori %14, %true : i1
    %16 = arith.extui %15 : i1 to i32
    %c0_i32 = arith.constant 0 : i32
    %17 = arith.cmpi ne, %16, %c0_i32 : i32
    scf.if %17 {
      %cst_13 = arith.constant dense<0.000000e+00> : vector<32xf32>
      %20 = vector.multi_reduction <add>, %13, %cst_13 [1] : vector<32x128xf32> to vector<32xf32>
      %21 = vector.shape_cast %20 : vector<32xf32> to vector<32x1xf32>
      %22 = vector.shape_cast %21 : vector<32x1xf32> to vector<32x1xf32>
      %23 = vector.broadcast %22 : vector<32x1xf32> to vector<32x128xf32>
      %c0_14 = arith.constant 0 : index
      %c0_15 = arith.constant 0 : index
      %24 = vector.load %arg6[%c0_14, %c0_15] : memref<32x128xf32, #tpu.memory_space<vmem>>, vector<32x128xf32>
      tpu.vector_store %arg6[%c0_14, %c0_15], %23 {strides = array<i32>} : memref<32x128xf32, #tpu.memory_space<vmem>>, vector<32x128xf32>,
      %25 = arith.mulf %13, %13 : vector<32x128xf32>
      %cst_16 = arith.constant dense<0.000000e+00> : vector<32xf32>
      %26 = vector.multi_reduction <add>, %25, %cst_16 [1] : vector<32x128xf32> to vector<32xf32>
      %27 = vector.shape_cast %26 : vector<32xf32> to vector<32x1xf32>
      %28 = vector.shape_cast %27 : vector<32x1xf32> to vector<32x1xf32>
      %29 = vector.broadcast %28 : vector<32x1xf32> to vector<32x128xf32>
      %c0_17 = arith.constant 0 : index
      %c0_18 = arith.constant 0 : index
      %30 = vector.load %arg7[%c0_17, %c0_18] : memref<32x128xf32, #tpu.memory_space<vmem>>, vector<32x128xf32>
      tpu.vector_store %arg7[%c0_17, %c0_18], %29 {strides = array<i32>} : memref<32x128xf32, #tpu.memory_space<vmem>>, vector<32x128xf32>,
    } else {
    }
    %18 = arith.extui %14 : i1 to i32
    %c0_i32_12 = arith.constant 0 : i32
    %19 = arith.cmpi ne, %18, %c0_i32_12 : i32
    scf.if %19 {
      %20 = tpu.iota {dimensions = array<i32: 1>} : vector<1x128xi32>
      %c72_i32 = arith.constant 72 : i32
      %21 = vector.broadcast %c72_i32 : i32 to vector<1x128xi32>
      %22 = arith.cmpi slt, %20, %21 : vector<1x128xi32>
      %cst_13 = arith.constant 0.000000e+00 : f32
      %23 = vector.shape_cast %22 : vector<1x128xi1> to vector<1x128xi1>
      %24 = vector.broadcast %23 : vector<1x128xi1> to vector<32x128xi1>
      %25 = vector.broadcast %cst_13 : f32 to vector<32x128xf32>
      %26 = arith.select %24, %13, %25 : vector<32x128xi1>, vector<32x128xf32>
      %cst_14 = arith.constant dense<0.000000e+00> : vector<32xf32>
      %27 = vector.multi_reduction <add>, %26, %cst_14 [1] : vector<32x128xf32> to vector<32xf32>
      %28 = vector.shape_cast %27 : vector<32xf32> to vector<32x1xf32>
      %29 = vector.shape_cast %28 : vector<32x1xf32> to vector<32x1xf32>
      %30 = vector.broadcast %29 : vector<32x1xf32> to vector<32x128xf32>
      %c0_15 = arith.constant 0 : index
      %c0_16 = arith.constant 0 : index
      %31 = vector.load %arg6[%c0_15, %c0_16] : memref<32x128xf32, #tpu.memory_space<vmem>>, vector<32x128xf32>
      tpu.vector_store %arg6[%c0_15, %c0_16], %30 {strides = array<i32>} : memref<32x128xf32, #tpu.memory_space<vmem>>, vector<32x128xf32>,
      %32 = arith.mulf %26, %26 : vector<32x128xf32>
      %cst_17 = arith.constant dense<0.000000e+00> : vector<32xf32>
      %33 = vector.multi_reduction <add>, %32, %cst_17 [1] : vector<32x128xf32> to vector<32xf32>
      %34 = vector.shape_cast %33 : vector<32xf32> to vector<32x1xf32>
      %35 = vector.shape_cast %34 : vector<32x1xf32> to vector<32x1xf32>
      %36 = vector.broadcast %35 : vector<32x1xf32> to vector<32x128xf32>
      %c0_18 = arith.constant 0 : index
      %c0_19 = arith.constant 0 : index
      %37 = vector.load %arg7[%c0_18, %c0_19] : memref<32x128xf32, #tpu.memory_space<vmem>>, vector<32x128xf32>
      tpu.vector_store %arg7[%c0_18, %c0_19], %36 {strides = array<i32>} : memref<32x128xf32, #tpu.memory_space<vmem>>, vector<32x128xf32>,
    } else {
    }
    return
  }
  func.func @transform_0(%arg0: i32) -> (i32, i32) {
    %c0_i32 = arith.constant 0 : i32
    %c0_i32_0 = arith.constant 0 : i32
    return %c0_i32, %arg0 : i32, i32
  }
  func.func @transform_1(%arg0: i32) -> (i32, i32) {
    %c0_i32 = arith.constant 0 : i32
    %c0_i32_0 = arith.constant 0 : i32
    return %c0_i32, %arg0 : i32, i32
  }
  func.func @transform_2(%arg0: i32) -> (i32, i32) {
    %c0_i32 = arith.constant 0 : i32
    %c0_i32_0 = arith.constant 0 : i32
    %c0_i32_1 = arith.constant 0 : i32
    return %c0_i32, %c0_i32_0 : i32, i32
  }
  func.func @transform_3(%arg0: i32) -> (i32, i32) {
    %c0_i32 = arith.constant 0 : i32
    %c0_i32_0 = arith.constant 0 : i32
    %c0_i32_1 = arith.constant 0 : i32
    return %c0_i32, %c0_i32_0 : i32, i32
  }
  func.func @transform_4(%arg0: i32) -> (i32, i32) {
    %c0_i32 = arith.constant 0 : i32
    %c0_i32_0 = arith.constant 0 : i32
    %c0_i32_1 = arith.constant 0 : i32
    return %c0_i32, %c0_i32_0 : i32, i32
  }
  func.func @transform_5(%arg0: i32) -> (i32, i32) {
    %c0_i32 = arith.constant 0 : i32
    %c0_i32_0 = arith.constant 0 : i32
    return %c0_i32, %arg0 : i32, i32
  }
  func.func @transform_6(%arg0: i32) -> (i32, i32) {
    %c0_i32 = arith.constant 0 : i32
    %c0_i32_0 = arith.constant 0 : i32
    return %c0_i32, %arg0 : i32, i32
  }
}

</mosaic_0001>

<bundles_post_ra>
// kernel: tpu_custom_call.1
= control target key start
LH: loop header
LB: loop body
LE: loop exit
PB: predicated region body
PF: predicated region fallthrough
CT: control target
= control target key end

     0   :  { %s1559_s0 = inlined_call_operand.vmem [shape: f32[4,256], index: 0, kind: input, shape index: {}]   ;;  %s1560_s1 = inlined_call_operand.vmem [shape: f32[3,256], index: 1, kind: input, shape index: {}]   ;;  %s1561_s2 = inlined_call_operand.vmem [shape: f32[32,4], index: 2, kind: input, shape index: {}]   ;;  %s1562_s3 = inlined_call_operand.vmem [shape: f32[32,3], index: 3, kind: input, shape index: {}]   ;;  %s1563_s4 = inlined_call_operand.vmem [shape: f32[32,3], index: 4, kind: input, shape index: {}]   ;;  %s1564_s5 = inlined_call_operand.hbm [shape: f32[32,256], index: 5, kind: output, shape index: {0}]   ;;  %s1565_s6 = inlined_call_operand.hbm [shape: f32[32,256], index: 6, kind: output, shape index: {1}]  }
   0x1   :  { %1566 = sst [smem:[#allocation8_spill]] %s1559_s0 }
   0x2   :  { %12 = vsyncpa [#allocation3], 0 }
   0x3   :  { %14 = vsyncpa [#allocation3 + $0x1], 0 }
   0x4   :  { %15 = vsyncpa [#allocation5], 0 }
   0x5   :  { %17 = vsyncpa [#allocation5 + $0x1], 0  ;;  %s1296_s21 = smov 0   ;;  %s1298_s22 = smov 0  }
   0x6   :  { %s1300_s23 = smov 0   ;;  %s1302_s24 = smov 0  }
   0x7 LB: > { %s1317_s25 = sadd.s32 4294967295, %s1248_s24   ;;  %s1017_s26 = sadd.s32 4294967294, %s1248_s24   ;;  %s1248_s24 = sphi %s1302_s24, %s1573_s24   ;;  %s1244_s23 = sphi %s1300_s23, %s1572_s23   ;;  %s1240_s22 = sphi %s1298_s22, %s1571_s22   ;;  %s1236_s21 = sphi %s1296_s21, %s1570_s21  }
   0x8   : > { %s1321_s27 = sadd.s32 1, %s1248_s24   ;;  %s145_s28 = sadd.s32 1, %s1244_s23 }
   0x9   : > { %s142_s29 = ssub.s32 %s1248_s24, %s1321_s27  ;;  %p155_p0 = scmp.ne.s32.totalorder %s1244_s23, %s1240_s22 }
   0xa   : > { %p143_p1 = scmp.eq.s32.totalorder %s142_s29, 0  ;;  %p156_p2 = scmp.eq.s32.totalorder %s1317_s25, 1 }
   0xb   : > { %p161_p3 = scmp.ne.s32.totalorder %s1240_s22, %s1236_s21  ;;  %p162_p4 = scmp.eq.s32.totalorder %s1017_s26, 1 }
   0xc   : > { %s1332_s30 = scalar_select %p143_p1, %s1244_s23, %s145_s28  }
   0xd   : > { %p1336_p5 = por %p156_p2, %p155_p0  ;;  %p1340_p6 = por %p162_p4, %p161_p3 }
   0xe   : > { %p1020_p7 = scmp.ge.s32.totalorder %s1248_s24, 1  ;;  %p229_p8 = scmp.lt.s32.totalorder %s1248_s24, 3 }
  0x10   : > { %p230_p9 = pnand %p1020_p7, %p229_p8 }
  0x11   : > { %p267_p10 = scmp.lt.s32.totalorder (!%p230_p9), %s1317_s25, 1  ;;  %s1357_s14 = sand.u32 (!%p230_p9), 1, %s1240_s22  }
  0x12   : > { %233 = sbr.rel (%p230_p9) target bundleno = 684 (0x2ac), region = 40  ;;  %s1021_s16 = sshll.u32 (!%p230_p9), %s1357_s14, 5 }
  0x13   : > { %s1569_s0 = sld [smem:[#allocation8_spill]] (!%p230_p9)  ;;  %s1446_s17 = scalar_lea.vmem (!%p230_p9), [#allocation2], %s1021_s16 }
  0x14   : > { %s1450_s18 = scalar_lea.vmem (!%p230_p9), [#allocation4], %s1021_s16 }
  0x17   : > { %s1348_s9 = scalar_select %p267_p10, %s1317_s25, 1  ;;  %v283_v0 = vld [vmem:[%s1562_s3 + $0x10] sm:$0xff]  ;;  %vm394_vm0 = vcmask 23552   ;;  %v281_v1 = vld [vmem:[%s1562_s3] sm:$0xff]  ;;  %v1250_v15 = vmov 683565275  }
  0x18   : > { %1076 = vmatprep.mubr.msk.f32.mxu1 %vm394_vm0, %v283_v0  ;;  %1073 = vmatprep.mubr.msk.f32.mxu0 %vm394_vm0, %v281_v1  ;;  %v1251_v17 = vmov 2475754826   ;;  %v1252_v19 = vmov 2131351028   ;;  %v1253_v21 = vmov 2102212464  }
  0x19   : > { %s1023_s15 = sshll.u32 %s1348_s9, 2  ;;  %v1254_v23 = vmov 920167782   ;;  %v1255_v30 = vmov 1326507024  }
  0x1a   : > { %s274_s19 = scalar_lea.vmem %s1560_s1, %s1023_s15  ;;  %s270_s28 = scalar_lea.vmem %s1569_s0, %s1023_s15 }
  0x1b   : > { %v276_v2 = vld [vmem:[%s274_s19] sm:$0x7] }
  0x1c   : > { %v1368_v3 = vmul.f32 10000.0, %v276_v2 }
  0x1e   : > { %v293_v4 = vand.u32 2139095040, %v1368_v3  ;;  %v290_v6 = vand.u32 2147483647, %v1368_v3  ;;  %vm292_vm8 = vcmp.lt.s32.totalorder %v1368_v3, 0 }
  0x20   : > { %v294_v5 = vshrl.u32 %v293_v4, 23  ;;  %v297_v9 = vand.u32 8388607, %v290_v6  ;;  %vm291_vm9 = vcmp.le.f32.partialorder %v290_v6, 0.7853982 }
  0x22   : > { %v1025_v7 = vadd.s32 4294967169, %v294_v5  ;;  %v298_v12 = vor.u32 8388608, %v297_v9 }
  0x24   : > { %v300_v8 = vadd.s32 1, %v1025_v7  ;;  %v338_v32 = vshll.u32 %v298_v12, 8 }
  0x26   : > { %vm301_vm1 = vcmp.gt.s32.totalorder %v300_v8, 0 }
  0x27   : > { %v302_v10 = vsel %vm301_vm1, %v300_v8, 0  ;;  %vm382_vm1 = vweird.f32 %v1368_v3 }
  0x28   : > { %v304_v11 = vand.u32 31, %v302_v10  ;;  %v303_v13 = vshrl.u32 %v302_v10, 5 }
  0x2a   : > { %v305_v14 = vsub.s32 32, %v304_v11  ;;  %v307_v16 = vshll.u32 %v1250_v15, %v304_v11  ;;  %v310_v18 = vshll.u32 %v1251_v17, %v304_v11  ;;  %v313_v20 = vshll.u32 %v1252_v19, %v304_v11 }
  0x2b   : > { %v316_v22 = vshll.u32 %v1253_v21, %v304_v11  ;;  %v319_v24 = vshll.u32 %v1254_v23, %v304_v11  ;;  %vm322_vm2 = vcmp.lt.s32.totalorder %v303_v13, 1  ;;  %vm325_vm3 = vcmp.lt.s32.totalorder %v303_v13, 4 }
  0x2c   : > { %v306_v25 = vshrl.u32 %v1250_v15, %v305_v14  ;;  %v308_v26 = vshrl.u32 %v1251_v17, %v305_v14  ;;  %v311_v27 = vshrl.u32 %v1252_v19, %v305_v14  ;;  %v314_v28 = vshrl.u32 %v1253_v21, %v305_v14 }
  0x2d   : > { %v317_v29 = vshrl.u32 %v1254_v23, %v305_v14  ;;  %v320_v31 = vshrl.u32 %v1255_v30, %v305_v14  ;;  %vm323_vm4 = vcmp.lt.s32.totalorder %v303_v13, 2  ;;  %vm324_vm5 = vcmp.lt.s32.totalorder %v303_v13, 3 }
  0x2e   : > { %v309_v33 = vor.u32 %v308_v26, %v307_v16  ;;  %v312_v34 = vor.u32 %v311_v27, %v310_v18  ;;  %v315_v35 = vor.u32 %v314_v28, %v313_v20 }
  0x2f   : > { %v318_v36 = vor.u32 %v317_v29, %v316_v22  ;;  %v321_v37 = vor.u32 %v320_v31, %v319_v24 }
  0x30   : > { %v326_v38 = vsel %vm322_vm2, %v306_v25, %v309_v33  ;;  %v327_v39 = vsel %vm325_vm3, %v315_v35, 2102212464  ;;  %v330_v40 = vsel %vm322_vm2, %v309_v33, %v312_v34  ;;  %v334_v41 = vsel %vm322_vm2, %v312_v34, %v315_v35 }
  0x31   : > { %v328_v42 = vsel %vm324_vm5, %v312_v34, %v327_v39  ;;  %v331_v43 = vsel %vm325_vm3, %v318_v36, 920167782  ;;  %v335_v44 = vsel %vm325_vm3, %v321_v37, 1326507024  ;;  %vm407_vm2 = vcmask 1042432  }
  0x32   : > { %v332_v45 = vsel %vm324_vm5, %v315_v35, %v331_v43  ;;  %v336_v46 = vsel %vm324_vm5, %v318_v36, %v335_v44  ;;  %v329_v47 = vsel %vm323_vm4, %v326_v38, %v328_v42  ;;  %v284_v36 = vld [vmem:[%s1562_s3 + $0x18] sm:$0xff]  ;;  %v275_v37 = vld [vmem:[%s270_s28] sm:$0xf]  ;;  %vm509_vm3 = vcmask 1043456   ;;  %v282_v38 = vld [vmem:[%s1562_s3 + $0x8] sm:$0xff] }
  0x33   : > { %v333_v48 = vsel %vm323_vm4, %v330_v40, %v332_v45  ;;  %v337_v49 = vsel %vm323_vm4, %v334_v41, %v336_v46  ;;  %v345_v54 = vmul.u32 %v338_v32, %v329_v47  ;;  %v277_v40 = vld [vmem:[%s1561_s2] sm:$0xff]  ;;  %vm496_vm4 = vcmask 31744   ;;  %v286_v42 = vld [vmem:[%s1563_s4 + $0x8] sm:$0xff]  ;;  %v279_v43 = vld [vmem:[%s1561_s2 + $0x10] sm:$0xff] }
  0x34   : > { %v1374_v50 = vmul.u32.u64.low %v338_v32, %v337_v49  ;;  %v1375_v51 = vmul.u32.u64.high %v338_v32, %v337_v49, %v1374_v50  ;;  %v1377_v52 = vmul.u32.u64.low %v338_v32, %v333_v48  ;;  %v1378_v53 = vmul.u32.u64.high %v338_v32, %v333_v48, %v1377_v52  ;;  %v285_v41 = vld [vmem:[%s1563_s4] sm:$0xff]  ;;  %v287_v44 = vld [vmem:[%s1563_s4 + $0x10] sm:$0xff]  ;;  %v280_v45 = vld [vmem:[%s1561_s2 + $0x18] sm:$0xff] }
  0x35   : > { %v288_v46 = vld [vmem:[%s1563_s4 + $0x18] sm:$0xff] }
  0x36   : > { %vm347_vm6 = vc.u32 %v1375_v51, %v1377_v52  ;;  %v348_v55 = vadd.s32 1, %v1378_v53  ;;  %v346_v2 = vadd.s32 %v1377_v52, %v1375_v51 }
  0x38   : > { %v349_v56 = vsel %vm347_vm6, %v348_v55, %v1378_v53 }
  0x39   : > { %v350_v57 = vadd.s32 %v349_v56, %v345_v54 }
  0x3b   : > { %v351_v58 = vadd.s32 536870912, %v350_v57 }
  0x3d   : > { %v352_v59 = vshrl.u32 %v351_v58, 30 }
  0x3f   : > { %v353_v60 = vshll.u32 %v352_v59, 30  ;;  %v376_v17 = vsub.s32 4, %v352_v59 }
  0x41   : > { %v354_v61 = vsub.s32 %v350_v57, %v353_v60  ;;  %v377_v20 = vsel %vm292_vm8, %v376_v17, %v352_v59 }
  0x42   : > { %v379_v22 = vsel %vm291_vm9, 0, %v377_v20 }
  0x43   : > { %v356_v62 = vsub.s32 0, %v354_v61  ;;  %v383_v23 = vadd.s32 3, %v379_v22  ;;  %v691_v25 = vand.u32 3, %v379_v22 }
  0x45   : > { %v1026_v63 = vmin.u32 %v356_v62, %v354_v61  ;;  %v384_v24 = vand.u32 3, %v383_v23  ;;  %vm696_vm11 = vcmp.eq.s32.totalorder %v691_v25, 2  ;;  %vm693_vm13 = vcmp.eq.s32.totalorder %v691_v25, 0 }
  0x46   : > { %vm692_vm15 = vcmp.lt.s32.totalorder %v691_v25, 2 }
  0x47   : > { %v358_v0 = vclz %v1026_v63  ;;  %vm389_vm10 = vcmp.eq.s32.totalorder %v384_v24, 2  ;;  %vm386_vm12 = vcmp.eq.s32.totalorder %v384_v24, 0  ;;  %vm385_vm14 = vcmp.lt.s32.totalorder %v384_v24, 2 }
  0x49   : > { %v1027_v1 = vadd.s32 4294967294, %v358_v0 }
  0x4b   : > { %vm1028_vm7 = vcmp.lt.s32.totalorder %v1027_v1, 0 }
  0x4c   : > { %v361_v4 = vsel %vm1028_vm7, 0, %v1027_v1 }
  0x4d   : > { %v362_v5 = vsub.s32 32, %v361_v4  ;;  %v363_v7 = vshll.u32 %v354_v61, %v361_v4  ;;  %v366_v8 = vsub.s32 4294967266, %v361_v4 }
  0x4f   : > { %v364_v9 = vshrl.u32 %v346_v2, %v362_v5  ;;  %v367_v10 = vadd.s32 127, %v366_v8 }
  0x51   : > { %v365_v11 = vor.u32 %v364_v9, %v363_v7  ;;  %v368_v12 = vshll.u32 %v367_v10, 23 }
  0x53   : > { %v369_v13 = vor.u32 4788187, %v368_v12  ;;  %v372_v14 = vcvt.s32.f32 %v365_v11 }
  0x55   : > { %v370_v15 = vand.u32 2147483647, %v369_v13 }
  0x57   : > { %v373_v16 = vmul.f32 %v372_v14, %v370_v15 }
  0x59   : > { %v374_v18 = vxor.u32 2147483648, %v373_v16 }
  0x5b   : > { %v375_v19 = vsel %vm292_vm8, %v374_v18, %v373_v16 }
  0x5c   : > { %v378_v21 = vsel %vm291_vm9, %v1368_v3, %v375_v19  ;;  %v278_v3 = vld [vmem:[%s1561_s2 + $0x8] sm:$0xff] }
  0x5d   : > { %1154 = vcosq.f32 %v378_v21 }
  0x5e   : > { %1156 = vsinq.f32 %v378_v21 }
  0x6a   : > { %v1155_v26 = vpop.eup %1154 }
  0x6b   : > { %v1157_v27 = vpop.eup %1156  ;;  %v390_v28 = vxor.u32 2147483648, %v1155_v26 }
  0x6c   : > { %v387_v6 = vxor.u32 2147483648, %v1157_v27 }
  0x6d   : > { %v391_v29 = vsel %vm389_vm10, %v390_v28, %v1157_v27  ;;  %v698_v30 = vsel %vm696_vm11, %v390_v28, %v1157_v27 }
  0x6e   : > { %v388_v31 = vsel %vm386_vm12, %v1155_v26, %v387_v6  ;;  %v695_v32 = vsel %vm693_vm13, %v1155_v26, %v387_v6 }
  0x6f   : > { %v392_v33 = vsel %vm385_vm14, %v388_v31, %v391_v29  ;;  %v699_v34 = vsel %vm692_vm15, %v695_v32, %v698_v30 }
  0x70   : > { %v393_v35 = vsel %vm382_vm1, nan, %v392_v33  ;;  %v700_v39 = vsel %vm382_vm1, nan, %v699_v34 }
  0x71   : > { %1095 = vmatprep.subr.msk.mxu1 %vm407_vm2, %v393_v35  ;;  %1071 = vmatprep.subr.msk.mxu0 %vm407_vm2, %v393_v35 }
  0x72   : > { %1096 = vmatpush3.msk.msra.mxu1 %vm407_vm2, %v393_v35  ;;  %1072 = vmatpush3.msk.msra.mxu0 %vm407_vm2, %v393_v35 }
  0x73   : > { %1077 = vmatmul.mubr.msk.f32.vlgmr.msra.gmra.mxu1 %vm394_vm0, %v284_v36  ;;  %1079 = vmatprep.subr.msk.mxu1 %vm509_vm3, %v275_v37 }
  0x74   : > { %1074 = vmatmul.mubr.msk.f32.vlgmr.msra.gmra.mxu0 %vm394_vm0, %v282_v38  ;;  %1080 = vmatpush3.msk.msra.mxu1 %vm509_vm3, %v275_v37 }
  0x75   : > { %1087 = vmatprep.subr.msk.mxu0 %vm407_vm2, %v700_v39  ;;  %1081 = vmatprep.mubr.msk.f32.mxu1 %vm496_vm4, %v277_v40 }
  0x76   : > { %1088 = vmatpush3.msk.msra.mxu0 %vm407_vm2, %v700_v39  ;;  %1089 = vmatprep.mubr.msk.f32.mxu0 %vm394_vm0, %v285_v41 }
  0x77   : > { %1082 = vmatmul.mubr.msk.f32.vlgmr.msra.gmra.mxu1 %vm496_vm4, %v278_v3 }
  0x78   : > { %1090 = vmatmul.mubr.msk.f32.vlgmr.msra.gmra.mxu0 %vm394_vm0, %v286_v42  ;;  %1084 = vmatprep.mubr.msk.f32.mxu1 %vm496_vm4, %v279_v43 }
  0x79   : > { %1092 = vmatprep.mubr.msk.f32.mxu0 %vm394_vm0, %v287_v44 }
  0x7b   : > { %1085 = vmatmul.mubr.msk.f32.gmra.mxu1 %vm496_vm4, %v280_v45 }
  0x7c   : > { %1093 = vmatmul.mubr.msk.f32.gmra.mxu0 %vm394_vm0, %v288_v46 }
 0x133   : > { %v1078_v47 = vpop.f32.mrf.mxu1 }
 0x134   : > { %v1075_v48 = vpop.f32.mrf.mxu0 }
 0x135   : > { %v487_v49 = vpop.f32.mrf.mxu1 }
 0x136   : > { %v477_v50 = vpop.f32.mrf.mxu0 }
 0x137   : > { %v1083_v51 = vpop.f32.mrf.mxu1 }
 0x138   : > { %v585_v52 = vadd.f32 %v1083_v51, %v1075_v48  ;;  %v1091_v53 = vpop.f32.mrf.mxu0 }
 0x139   : > { %v579_v54 = vpop.f32.mrf.mxu1 }
 0x13a   : > { %v802_v55 = vadd.f32 %v1091_v53, %v585_v52  ;;  %v580_v56 = vadd.f32 %v579_v54, %v477_v50  ;;  %v782_v57 = vpop.f32.mrf.mxu0 }
 0x13b   : > { %v1086_v58 = vpop.f32.mrf.mxu1 }
 0x13c   : > { %v801_v59 = vadd.f32 %v782_v57, %v580_v56  ;;  %v595_v60 = vadd.f32 %v1086_v58, %v1078_v47  ;;  %v1094_v61 = vpop.f32.mrf.mxu0  ;;  %809 = sbr.rel (%p156_p2) target bundleno = 473 (0x1d9), region = 44 }
 0x13d   : > { %v589_v62 = vpop.f32.mrf.mxu1 }
 0x13e   : > { %v804_v63 = vadd.f32 %v1094_v61, %v595_v60  ;;  %v590_v0 = vadd.f32 %v589_v62, %v487_v49  ;;  %v792_v1 = vpop.f32.mrf.mxu0 }
 0x140   : > { %v803_v2 = vadd.f32 %v792_v1, %v590_v0 }
 0x141   : > { %810 = vadd.xlane.f32.xlu0 %v801_v59  ;;  %v823_v4 = vmul.f32 %v802_v55, %v802_v55  ;;  %v822_v5 = vmul.f32 %v801_v59, %v801_v59  ;;  %v825_v7 = vmul.f32 %v804_v63, %v804_v63 }
 0x142   : > { %814 = vadd.xlane.f32.xlu1 %v803_v2  ;;  %v824_v8 = vmul.f32 %v803_v2, %v803_v2 }
 0x145   : > { %812 = vadd.xlane.f32.xlu0 %v802_v55 }
 0x146   : > { %816 = vadd.xlane.f32.xlu1 %v804_v63 }
 0x149   : > { %826 = vadd.xlane.f32.xlu0 %v822_v5 }
 0x14a   : > { %828 = vadd.xlane.f32.xlu1 %v823_v4 }
 0x14d   : > { %830 = vadd.xlane.f32.xlu0 %v824_v8 }
 0x14e   : > { %832 = vadd.xlane.f32.xlu1 %v825_v7 }
 0x1ca   : > { %v811_v10 = vpop.xlane.xlu0 %810 }
 0x1cb   : > { %v815_v9 = vpop.xlane.xlu1 %814  ;;  %818 = vst [vmem:[%s1446_s17] sm:$0xff] %v811_v10 }
 0x1cc   : > { %820 = vst [vmem:[%s1446_s17 + $0x10] sm:$0xff] %v815_v9 }
 0x1ce   : > { %v813_v12 = vpop.xlane.xlu0 %812 }
 0x1cf   : > { %v817_v11 = vpop.xlane.xlu1 %816  ;;  %819 = vst [vmem:[%s1446_s17 + $0x8] sm:$0xff] %v813_v12 }
 0x1d0   : > { %821 = vst [vmem:[%s1446_s17 + $0x18] sm:$0xff] %v817_v11 }
 0x1d2   : > { %v827_v14 = vpop.xlane.xlu0 %826 }
 0x1d3   : > { %v829_v13 = vpop.xlane.xlu1 %828  ;;  %834 = vst [vmem:[%s1450_s18] sm:$0xff] %v827_v14 }
 0x1d4   : > { %835 = vst [vmem:[%s1450_s18 + $0x8] sm:$0xff] %v829_v13 }
 0x1d6   : > { %v831_v16 = vpop.xlane.xlu0 %830 }
 0x1d7   : > { %v833_v15 = vpop.xlane.xlu1 %832  ;;  %836 = vst [vmem:[%s1450_s18 + $0x10] sm:$0xff] %v831_v16 }
 0x1d8   : > { %837 = vst [vmem:[%s1450_s18 + $0x18] sm:$0xff] %v833_v15 }
 0x1d9 PF: > { %p1049_p11 = scmp.ne.s32.totalorder %s1317_s25, 1 }
 0x1db   : > { %840 = sbr.rel (%p1049_p11) target bundleno = 637 (0x27d), region = 48 }
 0x1e0   : > { %v841_v17 = vlaneseq }
 0x1e2   : > { %v842_v18 = vand.u32 127, %v841_v17 }
 0x1e4   : > { %vm843_vm0 = vcmp.lt.s32.totalorder %v842_v18, 72 }
 0x1e5   : > { %v848_v19 = vsel %vm843_vm0, %v803_v2, 0.0  ;;  %v846_v20 = vsel %vm843_vm0, %v801_v59, 0.0  ;;  %v849_v21 = vsel %vm843_vm0, %v804_v63, 0.0  ;;  %v847_v22 = vsel %vm843_vm0, %v802_v55, 0.0 }
 0x1e6   : > { %854 = vadd.xlane.f32.xlu1 %v848_v19  ;;  %850 = vadd.xlane.f32.xlu0 %v846_v20  ;;  %v863_v23 = vmul.f32 %v847_v22, %v847_v22  ;;  %v862_v24 = vmul.f32 %v846_v20, %v846_v20  ;;  %v865_v25 = vmul.f32 %v849_v21, %v849_v21 }
 0x1e7   : > { %v864_v26 = vmul.f32 %v848_v19, %v848_v19 }
 0x1ea   : > { %856 = vadd.xlane.f32.xlu1 %v849_v21  ;;  %852 = vadd.xlane.f32.xlu0 %v847_v22 }
 0x1ee   : > { %868 = vadd.xlane.f32.xlu1 %v863_v23  ;;  %866 = vadd.xlane.f32.xlu0 %v862_v24 }
 0x1f2   : > { %872 = vadd.xlane.f32.xlu1 %v865_v25  ;;  %870 = vadd.xlane.f32.xlu0 %v864_v26 }
 0x26f   : > { %v855_v27 = vpop.xlane.xlu1 %854  ;;  %v851_v28 = vpop.xlane.xlu0 %850 }
 0x270   : > { %860 = vst [vmem:[%s1446_s17 + $0x10] sm:$0xff] %v855_v27  ;;  %858 = vst [vmem:[%s1446_s17] sm:$0xff] %v851_v28 }
 0x273   : > { %v857_v6 = vpop.xlane.xlu1 %856  ;;  %v853_v29 = vpop.xlane.xlu0 %852 }
 0x274   : > { %861 = vst [vmem:[%s1446_s17 + $0x18] sm:$0xff] %v857_v6  ;;  %859 = vst [vmem:[%s1446_s17 + $0x8] sm:$0xff] %v853_v29 }
 0x277   : > { %v869_v30 = vpop.xlane.xlu1 %868  ;;  %v867_v31 = vpop.xlane.xlu0 %866 }
 0x278   : > { %875 = vst [vmem:[%s1450_s18 + $0x8] sm:$0xff] %v869_v30  ;;  %874 = vst [vmem:[%s1450_s18] sm:$0xff] %v867_v31 }
 0x27b   : > { %v873_v32 = vpop.xlane.xlu1 %872  ;;  %v871_v33 = vpop.xlane.xlu0 %870 }
 0x27c   : > { %877 = vst [vmem:[%s1450_s18 + $0x18] sm:$0xff] %v873_v32  ;;  %876 = vst [vmem:[%s1450_s18 + $0x10] sm:$0xff] %v871_v33 }
 0x27d PF: > { %s1052_s16 = sshll.u32 %s1317_s25, 7  ;;  %s896_s28 = sshll.u32 %s1446_s17, 4  ;;  %s1480_s28 = int_to_ptr.vmem [resolvable:$true] %s896_s28 }
 0x27e   : > { %s1477_s26 = scalar_lea.hbm %s1564_s5, %s1052_s16  ;;  %s879_s29 = scalar_lea.sflag [#allocation3], %s1357_s14 }
 0x27f   : > { %s1158_s10 = scalar_lea.vmem %s1480_s28, 512  ;;  %s1256_s9 = smov [#allocation2]  }
 0x280   : > { %p1159_p12 = scmp.ne.s32.totalorder %s1480_s28, %s1158_s10  ;;  %s1162_s11 = sshll.u32 %s1256_s9, 4  ;;  %s1163_s11 = int_to_ptr.vmem [resolvable:$false] %s1162_s11 }
 0x281   : > { %s1164_s12 = scalar_lea.vmem %s1163_s11, 1024  ;;  %p1165_p1 = scmp.lt.s32.totalorder %s1480_s28, %s1163_s11 }
 0x282   : > { %p1160_p13 = pnand %p1159_p12, %p1336_p5  ;;  %p1166_p2 = scmp.lt.s32.totalorder %s1164_s12, %s1158_s10 }
 0x284   : > { %p1161_p0 = pneg %p1160_p13  ;;  %p1167_p3 = por %p1166_p2, %p1165_p1 }
 0x286   : > { %p1168_p4 = pnand %p1167_p3, %p1161_p0 }
 0x288   : > { %1171 = shalt.err (!%p1168_p4)
}
 0x289   : > { %s1172_s13 = scalar_lea.hbm %s1477_s26, 512  ;;  %s1176_s19 = scalar_lea.hbm %s1564_s5, 1024 }
 0x28a   : > { %p1173_p7 = scmp.ne.s32.totalorder %s1477_s26, %s1172_s13  ;;  %p1177_p10 = scmp.lt.s32.totalorder %s1477_s26, %s1564_s5 }
 0x28b   : > { %p1178_p11 = scmp.lt.s32.totalorder %s1176_s19, %s1172_s13 }
 0x28c   : > { %p1174_p8 = pnand %p1173_p7, %p1336_p5 }
 0x28d   : > { %p1179_p12 = por %p1178_p11, %p1177_p10 }
 0x28e   : > { %p1175_p9 = pneg %p1174_p8 }
 0x290   : > { %p1180_p13 = pnand %p1179_p12, %p1175_p9 }
 0x292   : > { %1183 = shalt.err (!%p1180_p13)
}
 0x293   : > { %s1257_s10 = smov 128   ;;  %s1258_s11 = smov 256  }
 0x294   : > { %s1259_s12 = smov 8   ;;  %s1513_s17 = scalar_lea.hbm %s1565_s6, %s1052_s16 }
 0x295   : > { %1101 = dma.vmem_to_hbm [thread:$0]  (%p1336_p5), %s1480_s28, 512, %s1477_s26, %s879_s29, %s1257_s10, %s1258_s11, %s1259_s12  }
 0x296   : > { %s911_s19 = sshll.u32 %s1450_s18, 4  ;;  %s884_s20 = scalar_lea.sflag [#allocation5], %s1357_s14  ;;  %s1516_s19 = int_to_ptr.vmem [resolvable:$true] %s911_s19 }
 0x297   : > { %s1184_s9 = scalar_lea.vmem %s1516_s19, 512  ;;  %s1260_s0 = smov [#allocation4]  }
 0x298   : > { %p1185_p0 = scmp.ne.s32.totalorder %s1516_s19, %s1184_s9  ;;  %s1188_s26 = sshll.u32 %s1260_s0, 4  ;;  %s1189_s26 = int_to_ptr.vmem [resolvable:$false] %s1188_s26 }
 0x299   : > { %s1190_s25 = scalar_lea.vmem %s1189_s26, 1024  ;;  %p1191_p3 = scmp.lt.s32.totalorder %s1516_s19, %s1189_s26 }
 0x29a   : > { %p1186_p1 = pnand %p1185_p0, %p1336_p5  ;;  %p1192_p4 = scmp.lt.s32.totalorder %s1190_s25, %s1184_s9 }
 0x29c   : > { %p1187_p2 = pneg %p1186_p1  ;;  %p1193_p7 = por %p1192_p4, %p1191_p3 }
 0x29e   : > { %p1194_p8 = pnand %p1193_p7, %p1187_p2 }
 0x2a0   : > { %1197 = shalt.err (!%p1194_p8)
}
 0x2a1   : > { %s1198_s18 = scalar_lea.hbm %s1513_s17, 512  ;;  %s1202_s0 = scalar_lea.hbm %s1565_s6, 1024 }
 0x2a2   : > { %p1199_p9 = scmp.ne.s32.totalorder %s1513_s17, %s1198_s18  ;;  %p1203_p12 = scmp.lt.s32.totalorder %s1513_s17, %s1565_s6 }
 0x2a3   : > { %p1204_p13 = scmp.lt.s32.totalorder %s1202_s0, %s1198_s18 }
 0x2a4   : > { %p1200_p10 = pnand %p1199_p9, %p1336_p5 }
 0x2a5   : > { %p1205_p0 = por %p1204_p13, %p1203_p12 }
 0x2a6   : > { %p1201_p11 = pneg %p1200_p10 }
 0x2a8   : > { %p1206_p1 = pnand %p1205_p0, %p1201_p11 }
 0x2aa   : > { %1209 = shalt.err (!%p1206_p1)
}
 0x2ab   : > { %1102 = dma.vmem_to_hbm [thread:$0]  (%p1336_p5), %s1516_s19, 512, %s1513_s17, %s884_s20, %s1257_s10, %s1258_s11, %s1259_s12  }
 0x2ac PF: > { %p1112_p2 = scmp.ge.s32.totalorder %s1248_s24, 2  ;;  %s926_s13 = sand.u32 1, %s1236_s21  }
 0x2ad   : > { %s927_s15 = scalar_lea.sflag [#allocation3], %s926_s13 }
 0x2ae   : > { %p1106_p3 = pnand %p1112_p2, %p1340_p6 }
 0x2b0   : > { %p1107_p4 = pneg %p1106_p3 }
 0x2b2   : > { %1227 = dma.done.wait (%p1107_p4), %s927_s15, 512  }
 0x2b3   : > { %1229 = vsyncadd (%p1107_p4), %s927_s15, 4294966784  ;;  %s936_s9 = scalar_lea.sflag [#allocation5], %s926_s13 }
 0x2b4   : > { %1231 = dma.done.wait (%p1107_p4), %s936_s9, 512  }
 0x2b5   : > { %1233 = vsyncadd (%p1107_p4), %s936_s9, 4294966784  ;;  %p20_p5 = scmp.ge.s32.totalorder %s1321_s27, 4   ;;  %s1570_s21 = smov %s1240_s22 }
 0x2b6   : > { %s1571_s22 = smov %s1244_s23  ;;  %s1572_s23 = smov %s1332_s30 }
 0x2b7   : > { %s1573_s24 = smov %s1321_s27  ;;  %22 = sbr.rel (!%p20_p5) target bundleno = 7 (0x7), region = 103 }
 0x2bc   :  { %941 = vsyncpa [#allocation3], 1 }
 0x2bd   :  { %943 = vsyncpa [#allocation3 + $0x1], 1 }
 0x2be   :  { %944 = vsyncpa [#allocation5], 1 }
 0x2bf   :  { %946 = vsyncpa [#allocation5 + $0x1], 1 }

</bundles_post_ra>
